<compile_context>
chip_gen: v7x
topology: tpu7x:2x2x1
jax: 0.10.0
libtpu: 0.0.40
codegen_flags: <defaults>
</compile_context>

<pallas_src>
import jax
import jax.numpy as jnp
from jax.experimental import pallas as pl
from jax.experimental.pallas import tpu as pltpu


def _round_up(x, m):
    return ((x + m - 1) // m) * m


def _attention_kernel(q_ref, k_ref, ctx_ref, score_ref):
    # q_ref: (tq, H), k_ref: (Tk, H) -- batch dim squeezed by the BlockSpecs.
    q = q_ref[...]            # keep MXU operands in the input dtype
    k = k_ref[...]

    # scores = q @ k^T (contract hidden dim), f32 accumulation on the MXU.
    s = jax.lax.dot_general(q, k, (((1,), (1,)), ((), ())),
                            preferred_element_type=jnp.float32)      # (tq, Tk)

    # Softmax over the key axis (PyTorch nn.Softmax(2)); max-stabilized, f32.
    # No column masking needed: the block spans the full, unpadded Tk.
    m = jnp.max(s, axis=-1, keepdims=True)
    e = jnp.exp(s - m)
    denom = jnp.sum(e, axis=-1, keepdims=True)
    # Exact reciprocal: the emitted Attscore rows must sum to 1 (1e-5 tol).
    p = e * pl.reciprocal(denom, approx=False)

    # context = softmax(scores) @ value, with value == key. Cast p back to the
    # input dtype so the second matmul also runs at full MXU rate for bf16.
    ctx = jnp.dot(p.astype(k.dtype), k, preferred_element_type=jnp.float32)

    score_ref[...] = p.astype(score_ref.dtype)
    ctx_ref[...] = ctx.astype(ctx_ref.dtype)


def attention(query, key):
    """query: (B, Tq, H), key: (B, Tk, H) -> (context (B,Tq,H), Attscore (B,Tq,Tk))."""
    B, Tq, H = query.shape
    Bk, Tk, Hk = key.shape
    assert B == Bk and H == Hk

    itemsize = jnp.dtype(query.dtype).itemsize
    # Sublane packing granularity: 8 rows for f32, 16 for bf16, 32 for int8/fp8.
    sub = max(8, 32 // itemsize)

    # Generation-aware VMEM knobs: large resident tiles on 128 MiB parts
    # (v5e/v6e), tighter intermediate-aware budget on v7x (64 MiB per TC).
    try:
        vmem_cap = int(pltpu.get_tpu_info().vmem_capacity_bytes)
    except Exception:
        vmem_cap = 64 * 1024 * 1024   # conservative fallback
    if vmem_cap >= 96 * 1024 * 1024:  # v5e / v6e class
        tile_budget = 80 * 1024 * 1024
        vmem_limit = 100 * 1024 * 1024
        tq_max = 512
    else:                             # v7x class
        tile_budget = 32 * 1024 * 1024
        vmem_limit = 48 * 1024 * 1024
        tq_max = 256
    vmem_limit = min(vmem_limit, int(vmem_cap * 0.85))

    # In-register/VMEM padded extents -- used ONLY for honest budget accounting
    # (the HBM arrays themselves are never padded).
    H_l = _round_up(H, 128)
    Tk_l = _round_up(Tk, 128)

    k_block_bytes = _round_up(Tk, sub) * H_l * itemsize
    # Single-buffer the resident K block only when it is big enough to matter.
    single_buffer_k = k_block_bytes >= 4 * 1024 * 1024

    def step_bytes(tq):
        tq_p = _round_up(tq, sub)
        q_b = tq_p * H_l * itemsize
        c_b = tq_p * H_l * itemsize
        s_b = tq_p * Tk_l * itemsize
        k_bufs = 1 if single_buffer_k else 2
        # Double-buffered pipelined blocks + kernel-internal f32 temporaries
        # (s, e, p ~ 3x (tq, Tk) f32 live simultaneously, plus the f32 context).
        io = 2 * (q_b + c_b + s_b) + k_bufs * k_block_bytes
        f32_tmp = 3 * tq_p * Tk_l * 4 + tq_p * H_l * 4
        return io + f32_tmp

    tq = min(_round_up(Tq, sub), tq_max)
    while tq > sub and step_bytes(tq) > tile_budget:
        tq = max(_round_up(tq // 2, sub), sub)

    # Megacore: make sure the parallel grid has >= 2 programs so both v7x
    # TensorCores get work (one TC would otherwise idle when B == 1).
    if B * pl.cdiv(Tq, tq) < 2 and Tq > sub:
        tq = max(_round_up(pl.cdiv(Tq, 2), sub), sub)

    # If one tile covers the whole query axis, use the exact extent (full-dim
    # block is legal regardless of alignment; avoids a partial block).
    if tq >= Tq:
        tq = Tq

    n_q_tiles = pl.cdiv(Tq, tq)

    # TODO(synk): for very long Tk where the resident (Tk, H) K block plus the
    # (tq, Tk) f32 temporaries no longer fit VMEM, add a Tk grid axis with
    # online-softmax accumulation.

    k_spec_kwargs = {}
    if single_buffer_k:
        # K's block index is constant across the Tq axis (changes only at batch
        # boundaries) -> single-buffer it to free VMEM for a larger query tile.
        k_spec_kwargs["pipeline_mode"] = pl.Buffered(1)

    grid_spec = pltpu.PrefetchScalarGridSpec(
        num_scalar_prefetch=0,
        grid=(B, n_q_tiles),
        in_specs=[
            # Batch dim squeezed out of the kernel view; full (unpadded) last
            # dims so no HBM-side padding is required.
            pl.BlockSpec((None, tq, H), lambda b, i: (b, i, 0)),
            pl.BlockSpec((None, Tk, H), lambda b, i: (b, 0, 0), **k_spec_kwargs),
        ],
        out_specs=[
            pl.BlockSpec((None, tq, H), lambda b, i: (b, i, 0)),
            pl.BlockSpec((None, tq, Tk), lambda b, i: (b, i, 0)),
        ],
    )

    ctx, score = pl.pallas_call(
        _attention_kernel,
        out_shape=(
            jax.ShapeDtypeStruct((B, Tq, H), query.dtype),
            jax.ShapeDtypeStruct((B, Tq, Tk), query.dtype),
        ),
        grid_spec=grid_spec,
        compiler_params=pltpu.CompilerParams(
            dimension_semantics=("parallel", "parallel"),
            vmem_limit_bytes=vmem_limit,
        ),
    )(query, key)

    return ctx, score


def _reference(query, key):
    s = jnp.einsum('bqd,bkd->bqk', query, key)
    p = jax.nn.softmax(s, axis=-1)
    ctx = jnp.einsum('bqk,bkd->bqd', p, key)
    return ctx, p


if __name__ == "__main__":
    # Small shapes consistent with the module: batch=2, seq=8, hidden=32.
    B, Tq, Tk, H = 2, 8, 8, 32
    k0, k1 = jax.random.split(jax.random.PRNGKey(0))
    query = jax.random.normal(k0, (B, Tq, H), dtype=jnp.float32)
    key = jax.random.normal(k1, (B, Tk, H), dtype=jnp.float32)

    context, attscore = attention(query, key)
    context = jax.block_until_ready(context)
    attscore = jax.block_until_ready(attscore)

    ctx_ref, score_ref = _reference(query, key)
    assert context.shape == (B, Tq, H) and attscore.shape == (B, Tq, Tk)
    assert jnp.allclose(context, ctx_ref, atol=1e-4, rtol=1e-4)
    assert jnp.allclose(attscore, score_ref, atol=1e-5, rtol=1e-5)
    assert jnp.allclose(jnp.sum(attscore, axis=-1), 1.0, atol=1e-5)

    print("KERNEL_OK")
</pallas_src>

<mosaic_0001>
module attributes {stable_mosaic.version = 11 : i64} {
  func.func @_attention_kernel(%arg0: i32, %arg1: i32, %arg2: memref<1x8x32xf32, #tpu.memory_space<vmem>>, %arg3: memref<1x8x32xf32, #tpu.memory_space<vmem>>, %arg4: memref<1x8x32xf32, #tpu.memory_space<vmem>>, %arg5: memref<1x8x8xf32, #tpu.memory_space<vmem>>) attributes {dimension_semantics = [#tpu.dimension_semantics<parallel>, #tpu.dimension_semantics<parallel>], iteration_bounds = array<i64: 2, 1>, scalar_prefetch = 0 : i64, scratch_operands = 0 : i64, tpu.core_type = #tpu.core_type<tc>, window_params = [{transform_indices = @transform_0, window_bounds = array<i64: 1, 8, 32>}, {transform_indices = @transform_1, window_bounds = array<i64: 1, 8, 32>}, {transform_indices = @transform_2, window_bounds = array<i64: 1, 8, 32>}, {transform_indices = @transform_3, window_bounds = array<i64: 1, 8, 8>}]} {
    %c0 = arith.constant 0 : index
    %c0_0 = arith.constant 0 : index
    %c0_1 = arith.constant 0 : index
    %0 = vector.load %arg2[%c0, %c0_0, %c0_1] : memref<1x8x32xf32, #tpu.memory_space<vmem>>, vector<1x8x32xf32>
    %1 = vector.shape_cast %0 : vector<1x8x32xf32> to vector<8x32xf32>
    %c0_2 = arith.constant 0 : index
    %c0_3 = arith.constant 0 : index
    %c0_4 = arith.constant 0 : index
    %2 = vector.load %arg3[%c0_2, %c0_3, %c0_4] : memref<1x8x32xf32, #tpu.memory_space<vmem>>, vector<1x8x32xf32>
    %3 = vector.shape_cast %2 : vector<1x8x32xf32> to vector<8x32xf32>
    %cst = arith.constant dense<0.000000e+00> : vector<8x8xf32>
    %4 = tpu.matmul %1, %3, %cst {dimension_numbers = #tpu.dot_dimension_numbers<[1], [1], [0], [0], [0, 0, 1, 0], [], []>} : vector<8x32xf32>, vector<8x32xf32>, vector<8x8xf32> -> vector<8x8xf32>
    %cst_5 = arith.constant dense<0xFF800000> : vector<8xf32>
    %5 = vector.multi_reduction <maximumf>, %4, %cst_5 [1] : vector<8x8xf32> to vector<8xf32>
    %6 = vector.shape_cast %5 : vector<8xf32> to vector<8x1xf32>
    %7 = vector.broadcast %6 : vector<8x1xf32> to vector<8x8xf32>
    %8 = arith.subf %4, %7 : vector<8x8xf32>
    %9 = math.exp %8 : vector<8x8xf32>
    %cst_6 = arith.constant dense<0.000000e+00> : vector<8xf32>
    %10 = vector.multi_reduction <add>, %9, %cst_6 [1] : vector<8x8xf32> to vector<8xf32>
    %11 = vector.shape_cast %10 : vector<8xf32> to vector<8x1xf32>
    %12 = tpu.reciprocal %11 : vector<8x1xf32> -> vector<8x1xf32>
    %13 = vector.broadcast %12 : vector<8x1xf32> to vector<8x8xf32>
    %14 = arith.mulf %9, %13 : vector<8x8xf32>
    %cst_7 = arith.constant dense<0.000000e+00> : vector<8x32xf32>
    %15 = tpu.matmul %14, %3, %cst_7 {dimension_numbers = #tpu.dot_dimension_numbers<[1], [0], [0], [1], [0, 0, 1, 1], [], []>} : vector<8x8xf32>, vector<8x32xf32>, vector<8x32xf32> -> vector<8x32xf32>
    %c0_8 = arith.constant 0 : index
    %c0_9 = arith.constant 0 : index
    %c0_10 = arith.constant 0 : index
    %16 = vector.load %arg5[%c0_8, %c0_9, %c0_10] : memref<1x8x8xf32, #tpu.memory_space<vmem>>, vector<1x8x8xf32>
    %17 = vector.shape_cast %16 : vector<1x8x8xf32> to vector<8x8xf32>
    %18 = vector.shape_cast %14 : vector<8x8xf32> to vector<1x8x8xf32>
    tpu.vector_store %arg5[%c0_8, %c0_9, %c0_10], %18 {strides = array<i32>} : memref<1x8x8xf32, #tpu.memory_space<vmem>>, vector<1x8x8xf32>,
    %c0_11 = arith.constant 0 : index
    %c0_12 = arith.constant 0 : index
    %c0_13 = arith.constant 0 : index
    %19 = vector.load %arg4[%c0_11, %c0_12, %c0_13] : memref<1x8x32xf32, #tpu.memory_space<vmem>>, vector<1x8x32xf32>
    %20 = vector.shape_cast %19 : vector<1x8x32xf32> to vector<8x32xf32>
    %21 = vector.shape_cast %15 : vector<8x32xf32> to vector<1x8x32xf32>
    tpu.vector_store %arg4[%c0_11, %c0_12, %c0_13], %21 {strides = array<i32>} : memref<1x8x32xf32, #tpu.memory_space<vmem>>, vector<1x8x32xf32>,
    return
  }
  func.func @transform_0(%arg0: i32, %arg1: i32) -> (i32, i32, i32) {
    %c0_i32 = arith.constant 0 : i32
    %c0_i32_0 = arith.constant 0 : i32
    return %arg0, %arg1, %c0_i32 : i32, i32, i32
  }
  func.func @transform_1(%arg0: i32, %arg1: i32) -> (i32, i32, i32) {
    %c0_i32 = arith.constant 0 : i32
    %c0_i32_0 = arith.constant 0 : i32
    %c0_i32_1 = arith.constant 0 : i32
    return %arg0, %c0_i32, %c0_i32_0 : i32, i32, i32
  }
  func.func @transform_2(%arg0: i32, %arg1: i32) -> (i32, i32, i32) {
    %c0_i32 = arith.constant 0 : i32
    %c0_i32_0 = arith.constant 0 : i32
    return %arg0, %arg1, %c0_i32 : i32, i32, i32
  }
  func.func @transform_3(%arg0: i32, %arg1: i32) -> (i32, i32, i32) {
    %c0_i32 = arith.constant 0 : i32
    %c0_i32_0 = arith.constant 0 : i32
    return %arg0, %arg1, %c0_i32 : i32, i32, i32
  }
}

</mosaic_0001>

<bundles_post_ra>
// kernel: tpu_custom_call.1
= control target key start
LH: loop header
LB: loop body
LE: loop exit
PB: predicated region body
PF: predicated region fallthrough
CT: control target
= control target key end

     0   :  { %9 = vsyncpa [#allocation3], 0  ;;  %s1169_s0 = inlined_call_operand.hbm [shape: f32[2,8,32], index: 0, kind: input, shape index: {}]   ;;  %s1170_s1 = inlined_call_operand.hbm [shape: f32[2,8,32], index: 1, kind: input, shape index: {}]   ;;  %s1171_s2 = inlined_call_operand.hbm [shape: f32[2,8,32], index: 2, kind: output, shape index: {0}]   ;;  %s1172_s3 = inlined_call_operand.hbm [shape: f32[2,8,8], index: 3, kind: output, shape index: {1}]  }
   0x1   :  { %11 = vsyncpa [#allocation3 + $0x1], 0 }
   0x2   :  { %12 = vsyncpa [#allocation6], 0 }
   0x3   :  { %14 = vsyncpa [#allocation6 + $0x1], 0 }
   0x4   :  { %15 = vsyncpa [#allocation4], 0 }
   0x5   :  { %17 = vsyncpa [#allocation4 + $0x1], 0 }
   0x6   :  { %18 = vsyncpa [#allocation9], 0 }
   0x7   :  { %20 = vsyncpa [#allocation9 + $0x1], 0  ;;  %s909_s12 = smov 0   ;;  %s911_s13 = smov 0  }
   0x8   :  { %s913_s14 = smov 0   ;;  %s915_s15 = smov 0  }
   0x9   :  { %s917_s16 = smov 0   ;;  %s919_s17 = smov 0  }
   0xa LB: > { %s589_s18 = sadd.s32 4294967295, %s881_s17   ;;  %s590_s19 = sadd.s32 4294967294, %s881_s17   ;;  %s881_s17 = sphi %s919_s17, %s26_s17   ;;  %s877_s16 = sphi %s917_s16, %s1192_s16   ;;  %s873_s15 = sphi %s915_s15, %s1191_s15   ;;  %s869_s14 = sphi %s913_s14, %s1190_s14   ;;  %s865_s13 = sphi %s911_s13, %s1189_s13   ;;  %s861_s12 = sphi %s909_s12, %s1188_s12  }
   0xb   : > { %s38_s20 = sadd.s32 1, %s877_s16  ;;  %s47_s21 = sadd.s32 1, %s869_s14 }
   0xc   : > { %p40_p0 = scmp.ge.s32.totalorder %s38_s20, 2  ;;  %p54_p1 = scmp.ne.s32.totalorder %s869_s14, %s865_s13 }
   0xd   : > { %p55_p2 = scmp.eq.s32.totalorder %s881_s17, 0  ;;  %p60_p3 = scmp.ne.s32.totalorder %s865_s13, %s861_s12 }
   0xe   : > { %s1194_s20 = smov (%p40_p0, %s38_s20), 0  ;;  %p61_p5 = scmp.eq.s32.totalorder %s589_s18, 0 }
   0xf   : > { %p950_p4 = por %p55_p2, %p54_p1  ;;  %s42_s23 = ssub.s32 %s877_s16, %s1194_s20 }
  0x10   : > { %p112_p6 = scmp.eq.s32.totalorder %s589_s18, 1  ;;  %p45_p7 = scmp.eq.s32.totalorder %s42_s23, 0 }
  0x11   : > { %p956_p8 = por %p61_p5, %p60_p3  ;;  %p118_p10 = scmp.eq.s32.totalorder %s590_s19, 1 }
  0x12   : > { %p960_p9 = por %p112_p6, %p54_p1  ;;  %p647_p13 = scmp.lt.s32.totalorder %s881_s17, 2 }
  0x13   : > { %s1176_s24 = scalar_select %p956_p8, 1, 0 }
  0x14   : > { %s1177_s25 = scalar_select %p960_p9, 1, 0 }
  0x15   : > { %s965_s26 = scalar_select %p45_p7, %s869_s14, %s47_s21  }
  0x16   : > { %p967_p11 = por %p118_p10, %p60_p3  ;;  %s974_s28 = sand.u32 1, %s869_s14  }
  0x17   : > { %s593_s29 = sshll.u32 %s974_s28, 3  ;;  %s594_s30 = sshll.u32 %s877_s16, 7 }
  0x18   : > { %s1178_s27 = scalar_select %p967_p11, 1, 0 }
  0x19   : > { %s983_s6 = scalar_lea.hbm %s1169_s0, %s594_s30  ;;  %s170_s7 = scalar_lea.vmem [#allocation2], %s593_s29 }
  0x1a   : > { %s178_s8 = sshll.u32 %s170_s7, 4  ;;  %p991_p0 = pnand %p647_p13, %p950_p4  ;;  %s987_s8 = int_to_ptr.vmem [resolvable:$true] %s178_s8 }
  0x1b   : > { %s167_s10 = scalar_lea.sflag [#allocation3], %s974_s28  ;;  %s703_s11 = scalar_lea.hbm %s983_s6, 128 }
  0x1c   : > { %p704_p3 = scmp.ne.s32.totalorder %s983_s6, %s703_s11  ;;  %p705_p5 = pneg %p991_p0 }
  0x1d   : > { %s708_s21 = scalar_lea.hbm %s1169_s0, 256  ;;  %p709_p4 = scmp.lt.u32.totalorder %s983_s6, %s1169_s0 }
  0x1e   : > { %p706_p6 = pnand %p705_p5, %p704_p3  ;;  %p710_p10 = scmp.lt.u32.totalorder %s708_s21, %s703_s11 }
  0x1f   : > { %p712_p12 = scmp.lt.u32.totalorder %s703_s11, %s983_s6 }
  0x20   : > { %p707_p7 = pneg %p706_p6  ;;  %p711_p13 = por %p710_p10, %p709_p4 }
  0x22   : > { %p713_p1 = por %p712_p12, %p711_p13 }
  0x24   : > { %p714_p2 = pnand %p713_p1, %p707_p7 }
  0x26   : > { %717 = shalt.err (!%p714_p2)
}
  0x27   : > { %s718_s4 = scalar_lea.vmem %s987_s8, 128  ;;  %s883_s5 = smov [#allocation2]  }
  0x28   : > { %p719_p3 = scmp.ne.s32.totalorder %s987_s8, %s718_s4  ;;  %s723_s7 = sshll.u32 %s883_s5, 4  ;;  %s724_s7 = int_to_ptr.vmem [resolvable:$false] %s723_s7 }
  0x29   : > { %s725_s18 = scalar_lea.vmem %s724_s7, 256  ;;  %p726_p9 = scmp.lt.s32.totalorder %s987_s8, %s724_s7 }
  0x2a   : > { %p721_p6 = pnand %p719_p3, %p705_p5  ;;  %p727_p4 = scmp.lt.s32.totalorder %s725_s18, %s718_s4 }
  0x2c   : > { %p722_p11 = pneg %p721_p6  ;;  %p728_p10 = por %p727_p4, %p726_p9 }
  0x2e   : > { %p729_p12 = pnand %p728_p10, %p722_p11 }
  0x30   : > { %732 = shalt.err (!%p729_p12)
}
  0x31   : > { %636 = dma.hbm_to_vmem [thread:$0]  (!%p991_p0), %s983_s6, 128, %s987_s8, %s167_s10  }
  0x32   : > { %p1180_p1 = scmp.lt.s32.totalorder %s881_s17, 3  ;;  %p1181_p2 = scmp.ge.s32.totalorder %s881_s17, 1 }
  0x33   : > { %s1036_s22 = scalar_lea.hbm %s1170_s1, %s594_s30  ;;  %s189_s23 = scalar_lea.vmem [#allocation5], %s593_s29 }
  0x34   : > { %p1027_p7 = pnand %p1181_p2, %p1180_p1  ;;  %s196_s4 = sshll.u32 %s189_s23, 4  ;;  %s197_s4 = int_to_ptr.vmem [resolvable:$true] %s196_s4 }
  0x35   : > { %s186_s6 = scalar_lea.sflag [#allocation6], %s974_s28  ;;  %s733_s8 = scalar_lea.hbm %s1036_s22, 128 }
  0x36   : > { %s1182_s11 = scalar_select %p1027_p7, 1, 0 }
  0x37   : > { %p734_p9 = scmp.ne.s32.totalorder %s1036_s22, %s733_s8  ;;  %s738_s30 = scalar_lea.hbm %s1170_s1, 256 }
  0x38   : > { %p739_p3 = scmp.lt.u32.totalorder %s1036_s22, %s1170_s1  ;;  %p740_p6 = scmp.lt.u32.totalorder %s738_s30, %s733_s8 }
  0x39   : > { %p736_p11 = pnand %p734_p9, %p705_p5  ;;  %p742_p10 = scmp.lt.u32.totalorder %s733_s8, %s1036_s22 }
  0x3a   : > { %p741_p4 = por %p740_p6, %p739_p3 }
  0x3b   : > { %p737_p13 = pneg %p736_p11 }
  0x3c   : > { %p743_p12 = por %p742_p10, %p741_p4 }
  0x3e   : > { %p744_p1 = pnand %p743_p12, %p737_p13 }
  0x40   : > { %747 = shalt.err (!%p744_p1)
}
  0x41   : > { %s748_s28 = scalar_lea.vmem %s197_s4, 128  ;;  %s884_s29 = smov [#allocation5]  }
  0x42   : > { %p749_p2 = scmp.ne.s32.totalorder %s197_s4, %s748_s28  ;;  %s753_s19 = sshll.u32 %s884_s29, 4  ;;  %s754_s19 = int_to_ptr.vmem [resolvable:$false] %s753_s19 }
  0x43   : > { %s755_s21 = scalar_lea.vmem %s754_s19, 256  ;;  %p756_p8 = scmp.lt.s32.totalorder %s197_s4, %s754_s19 }
  0x44   : > { %p751_p9 = pnand %p749_p2, %p705_p5  ;;  %p757_p7 = scmp.lt.s32.totalorder %s755_s21, %s748_s28 }
  0x46   : > { %p752_p11 = pneg %p751_p9  ;;  %p758_p3 = por %p757_p7, %p756_p8 }
  0x48   : > { %p759_p6 = pnand %p758_p3, %p752_p11 }
  0x4a   : > { %762 = shalt.err (!%p759_p6)
}
  0x4b   : > { %639 = dma.hbm_to_vmem [thread:$0]  (!%p991_p0), %s1036_s22, 128, %s197_s4, %s186_s6  }
  0x4c   : > { %p1183_p13 = scmp.ne.s32.totalorder %s1182_s11, 0 }
  0x4d   : > { %s1063_s23 = sand.u32 (!%p1183_p13), 1, %s865_s13   ;;  %p1184_p8 = scmp.ne.s32.totalorder (!%p1183_p13), %s1176_s24, 0 }
  0x4e   : > { %205 = sbr.rel (%p1183_p13) target bundleno = 846 (0x34e), region = 28  ;;  %s1066_s8 = sshll.u32 (!%p1183_p13), %s1063_s23, 3 }
  0x4f   : > { %s208_s10 = scalar_lea.sflag (!%p1183_p13), [#allocation3], %s1063_s23  ;;  %s211_s5 = scalar_lea.vmem (!%p1183_p13), [#allocation2], %s1066_s8 }
  0x55   : > { %844 = dma.done.wait (%p1184_p8), %s208_s10, 128  }
  0x56   : > { %846 = vsyncadd (%p1184_p8), %s208_s10, 4294967168  ;;  %s217_s9 = scalar_lea.sflag [#allocation6], %s1063_s23  ;;  %s220_s11 = scalar_lea.vmem [#allocation5], %s1066_s8 }
  0x57   : > { %848 = dma.done.wait (%p1184_p8), %s217_s9, 128  }
  0x58   : > { %850 = vsyncadd (%p1184_p8), %s217_s9, 4294967168  ;;  %v885_v0 = vmov 0.0   ;;  %vm886_vm0 = vmmov 0   ;;  %vm255_vm1 = vcmask 261120   ;;  %v254_v1 = vld [vmem:[%s220_s11] sm:$0xff]  ;;  %v253_v2 = vld [vmem:[%s211_s5] sm:$0xff] }
  0x59   : > { %615 = vmatprep.subr.mxu0 %v885_v0  ;;  %617 = vmatprep.mubr.msk.f32.mxu0 %vm886_vm0, %v885_v0  ;;  %vm332_vm2 = vcmask 64512   ;;  %s252_s24 = scalar_lea.vmem [#allocation8], %s1066_s8  ;;  %s607_s22 = sshll.u32 %s873_s15, 7 }
  0x5a   : > { %620 = vmatprep.subr.mxu1 %v885_v0  ;;  %622 = vmatprep.mubr.msk.f32.mxu1 %vm886_vm0, %v885_v0  ;;  %s1093_s30 = scalar_lea.hbm %s1172_s3, %s607_s22  ;;  %s453_s7 = sshll.u32 %s252_s24, 4  ;;  %s454_s7 = int_to_ptr.vmem [resolvable:$true] %s453_s7 }
  0x5b   : > { %616 = vmatpush3.xpose.msk.msra.mxu0 %vm255_vm1, %v254_v1  ;;  %621 = vmatpush3.msra.mxu1 %v254_v1  ;;  %s425_s18 = scalar_lea.sflag [#allocation9], %s1063_s23  ;;  %s763_s28 = scalar_lea.vmem %s454_s7, 128 }
  0x5c   : > { %p764_p0 = scmp.ne.s32.totalorder %s454_s7, %s763_s28  ;;  %p1185_p5 = scmp.ne.s32.totalorder %s1177_s25, 0 }
  0x5d   : > { %s887_s29 = smov [#allocation8]  }
  0x5e   : > { %618 = vmatmul.mubr.msk.f32.vlgmr.msra.gmra.mrb[0].mxu0 %vm255_vm1, %v253_v2  ;;  %p765_p7 = pnand %p764_p0, %p1185_p5  ;;  %s767_s19 = sshll.u32 %s887_s29, 4  ;;  %s768_s19 = int_to_ptr.vmem [resolvable:$false] %s767_s19 }
  0x5f   : > { %s769_s21 = scalar_lea.vmem %s768_s19, 256  ;;  %p770_p10 = scmp.lt.s32.totalorder %s454_s7, %s768_s19 }
  0x60   : > { %p766_p4 = pneg %p765_p7  ;;  %p771_p12 = scmp.lt.s32.totalorder %s769_s21, %s763_s28 }
  0x62   : > { %p772_p1 = por %p771_p12, %p770_p10 }
  0x64   : > { %p773_p2 = pnand %p772_p1, %p766_p4 }
 0x131   : > { %v328_v3 = vpop.f32.mrb[0].mxu0 }
 0x132   : > { %v619_v4 = vpop.f32.mrb[1].mxu0  ;;  %v333_v5 = vsel %vm332_vm2, %v328_v3, -inf }
 0x133   : > { %334 = vmax.xlane.f32.xlu0 %v333_v5 }
 0x1c0   : > { %v335_v6 = vpop.xlane.xlu0 %334 }
 0x1c1   : > { %v336_v7 = vsub.f32 %v328_v3, %v335_v6 }
 0x1c3   : > { %v337_v8 = vmul.f32 1.442695, %v336_v7 }
 0x1c5   : > { %699 = vpow2.f32 %v337_v8 }
 0x1cf   : > { %v700_v9 = vpop.eup %699 }
 0x1d0   : > { %v339_v10 = vsel %vm332_vm2, %v700_v9, 0.0 }
 0x1d1   : > { %340 = vadd.xlane.f32.xlu0 %v339_v10 }
 0x25e   : > { %v341_v11 = vpop.xlane.xlu0 %340 }
 0x25f   : > { %701 = vrcp.f32 %v341_v11 }
 0x269   : > { %v702_v12 = vpop.eup %701 }
 0x26a   : > { %v343_v13 = vmul.f32 %v702_v12, %v700_v9 }
 0x26c   : > { %623 = vmatmul.mubr.msk.f32.vlgmr.msra.gmra.mrb[0].mxu1 %vm332_vm2, %v343_v13  ;;  %417 = vst.msk [vmem:[%s252_s24] sm:$0xff] %vm332_vm2, %v343_v13 }
 0x26d   : > { %776 = shalt.err (!%p773_p2)
}
 0x26e   : > { %s777_s10 = scalar_lea.hbm %s1093_s30, 128  ;;  %s781_s11 = scalar_lea.hbm %s1172_s3, 256 }
 0x26f   : > { %p778_p9 = scmp.ne.s32.totalorder %s1093_s30, %s777_s10  ;;  %p782_p6 = scmp.lt.u32.totalorder %s1093_s30, %s1172_s3 }
 0x270   : > { %p783_p13 = scmp.lt.u32.totalorder %s781_s11, %s777_s10  ;;  %p785_p0 = scmp.lt.u32.totalorder %s777_s10, %s1093_s30 }
 0x271   : > { %p779_p11 = pnand %p778_p9, %p1185_p5 }
 0x272   : > { %p784_p8 = por %p783_p13, %p782_p6 }
 0x273   : > { %p780_p3 = pneg %p779_p11 }
 0x274   : > { %p786_p7 = por %p785_p0, %p784_p8 }
 0x276   : > { %p787_p4 = pnand %p786_p7, %p780_p3 }
 0x278   : > { %790 = shalt.err (!%p787_p4)
}
 0x279   : > { %630 = dma.vmem_to_hbm [thread:$0]  (%p1185_p5), %s454_s7, 128, %s1093_s30, %s425_s18  }
 0x27a   : > { %s245_s6 = scalar_lea.vmem [#allocation7], %s1066_s8  ;;  %s1119_s21 = scalar_lea.hbm %s1171_s2, %s607_s22 }
 0x27b   : > { %s439_s28 = sshll.u32 %s245_s6, 4  ;;  %s420_s10 = scalar_lea.sflag [#allocation4], %s1063_s23  ;;  %s1121_s28 = int_to_ptr.vmem [resolvable:$true] %s439_s28 }
 0x27c   : > { %s791_s5 = scalar_lea.vmem %s1121_s28, 128  ;;  %s888_s15 = smov [#allocation7]  }
 0x27d   : > { %p792_p10 = scmp.ne.s32.totalorder %s1121_s28, %s791_s5  ;;  %s795_s8 = sshll.u32 %s888_s15, 4  ;;  %s796_s8 = int_to_ptr.vmem [resolvable:$false] %s795_s8 }
 0x27e   : > { %s797_s22 = scalar_lea.vmem %s796_s8, 256  ;;  %p798_p2 = scmp.lt.s32.totalorder %s1121_s28, %s796_s8 }
 0x27f   : > { %p793_p12 = pnand %p792_p10, %p1185_p5  ;;  %p799_p9 = scmp.lt.s32.totalorder %s797_s22, %s791_s5 }
 0x281   : > { %p794_p1 = pneg %p793_p12  ;;  %p800_p11 = por %p799_p9, %p798_p2 }
 0x283   : > { %p801_p3 = pnand %p800_p11, %p794_p1 }
 0x33f   : > { %v413_v14 = vpop.f32.mrb[0].mxu1 }
 0x340   : > { %418 = vst.msk [vmem:[%s245_s6] sm:$0xff] %vm255_vm1, %v413_v14  ;;  %v624_v15 = vpop.f32.mrb[1].mxu1 }
 0x341   : > { %804 = shalt.err (!%p801_p3)
}
 0x342   : > { %s805_s23 = scalar_lea.hbm %s1119_s21, 128  ;;  %s809_s18 = scalar_lea.hbm %s1171_s2, 256 }
 0x343   : > { %p806_p6 = scmp.ne.s32.totalorder %s1119_s21, %s805_s23  ;;  %p810_p0 = scmp.lt.u32.totalorder %s1119_s21, %s1171_s2 }
 0x344   : > { %p811_p7 = scmp.lt.u32.totalorder %s809_s18, %s805_s23  ;;  %p813_p10 = scmp.lt.u32.totalorder %s805_s23, %s1119_s21 }
 0x345   : > { %p807_p13 = pnand %p806_p6, %p1185_p5 }
 0x346   : > { %p812_p4 = por %p811_p7, %p810_p0 }
 0x347   : > { %p808_p8 = pneg %p807_p13 }
 0x348   : > { %p814_p12 = por %p813_p10, %p812_p4 }
 0x34a   : > { %p815_p1 = pnand %p814_p12, %p808_p8 }
 0x34c   : > { %818 = shalt.err (!%p815_p1)
}
 0x34d   : > { %629 = dma.vmem_to_hbm [thread:$0]  (%p1185_p5), %s1121_s28, 128, %s1119_s21, %s420_s10  }
 0x34e PF: > { %s465_s24 = sand.u32 1, %s861_s12   ;;  %p1186_p2 = scmp.ne.s32.totalorder %s1178_s27, 0 }
 0x34f   : > { %p1187_p9 = scmp.ge.s32.totalorder %s881_s17, 2  ;;  %s466_s4 = scalar_lea.sflag [#allocation4], %s465_s24 }
 0x351   : > { %p641_p11 = pnand %p1187_p9, %p1186_p2 }
 0x353   : > { %852 = dma.done.wait (!%p641_p11), %s466_s4, 128  }
 0x354   : > { %854 = vsyncadd (!%p641_p11), %s466_s4, 4294967168  ;;  %s475_s6 = scalar_lea.sflag [#allocation9], %s465_s24 }
 0x355   : > { %856 = dma.done.wait (!%p641_p11), %s475_s6, 128  }
 0x356   : > { %858 = vsyncadd (!%p641_p11), %s475_s6, 4294967168  ;;  %s26_s17 = sadd.s32 1, %s881_s17   ;;  %s1188_s12 = smov %s865_s13 }
 0x357   : > { %p23_p3 = scmp.ge.s32.totalorder %s26_s17, 4   ;;  %s1189_s13 = smov %s869_s14 }
 0x358   : > { %s1190_s14 = smov %s965_s26  ;;  %s1191_s15 = smov %s877_s16 }
 0x359   : > { %s1192_s16 = smov %s1194_s20  ;;  %25 = sbr.rel (!%p23_p3) target bundleno = 10 (0xa), region = 103 }
 0x360   :  { %480 = vsyncpa [#allocation3], 1 }
 0x361   :  { %482 = vsyncpa [#allocation3 + $0x1], 1 }
 0x362   :  { %483 = vsyncpa [#allocation6], 1 }
 0x363   :  { %485 = vsyncpa [#allocation6 + $0x1], 1 }
 0x364   :  { %486 = vsyncpa [#allocation4], 1 }
 0x365   :  { %488 = vsyncpa [#allocation4 + $0x1], 1 }
 0x366   :  { %489 = vsyncpa [#allocation9], 1 }
 0x367   :  { %491 = vsyncpa [#allocation9 + $0x1], 1 }

</bundles_post_ra>
